<compile_context>
chip_gen: v7x
topology: tpu7x:2x2x1
jax: 0.10.0
libtpu: 0.0.40
codegen_flags: <defaults>
</compile_context>

<pallas_src>
import functools

import jax
import jax.numpy as jnp
from jax import lax
from jax.experimental import pallas as pl
from jax.experimental.pallas import tpu as pltpu


def _dwconv_kernel(x_ref, w_ref, m_ref, o_ref, *, W):
    """One (batch, channel-block) step over a flattened (C_blk, H*W) slab.

    x_ref: (C_blk, HW)   activation slab (any float dtype)
    w_ref: (C_blk, 10)   f32: 9 taps (ky*3+kx) + bias
    m_ref: (4, HW)       f32 border masks: col>=1, col<=W-2, row>=1, row<=H-2
    o_ref: (C_blk, HW)
    """
    f32 = jnp.float32
    x = x_ref[...].astype(f32)           # single upfront cast; stays in vregs
    wb = w_ref[...]                      # (C_blk, 10)
    m = m_ref[...]                       # (4, HW)

    L = x.shape[-1]                      # H * W
    m_l = m[0:1, :]                      # left neighbour valid  (col >= 1)
    m_r = m[1:2, :]                      # right neighbour valid (col <= W-2)
    m_u = m[2:3, :]                      # upper neighbour valid (row >= 1)
    m_d = m[3:4, :]                      # lower neighbour valid (row <= H-2)

    # W-direction neighbours via XLU roll on the flattened lane axis.
    # roll(x, s)[p] = x[p - s]; wrap-around / row-crossing elements are exactly
    # the masked ones, which reproduces zero padding.
    x_left = pltpu.roll(x, 1, axis=1) * m_l          # x[p - 1]
    x_right = pltpu.roll(x, L - 1, axis=1) * m_r     # x[p + 1]

    def tap(k):                          # per-channel scalar tap, (C_blk, 1)
        return wb[:, k:k + 1]

    # r_ky[p] = sum_kx w[ky, kx] * x[row, col + kx - 1]
    r_top = tap(0) * x_left + tap(1) * x + tap(2) * x_right
    r_mid = tap(3) * x_left + tap(4) * x + tap(5) * x_right
    r_bot = tap(6) * x_left + tap(7) * x + tap(8) * x_right

    # out[p] = r_top[p - W] + r_mid[p] + r_bot[p + W] + bias
    acc = r_mid + tap(9)
    acc = acc + pltpu.roll(r_top, W, axis=1) * m_u        # contribution of row i-1
    acc = acc + pltpu.roll(r_bot, L - W, axis=1) * m_d    # contribution of row i+1

    o_ref[...] = acc.astype(o_ref.dtype)


def _pick_c_blk(C, HW, itemsize, target_bytes=1 << 20, cap=512):
    """Largest legal channel block: divides C, multiple of 8 (or == C), <= ~1 MB."""
    legal = [d for d in range(1, C + 1)
             if C % d == 0 and (d % 8 == 0 or d == C)]
    fitting = [d for d in legal if d <= cap and d * HW * itemsize <= target_bytes]
    if fitting:
        return max(fitting)
    return min(legal)


def dwconv_pallas(x_nchw, weight, bias):
    """Depthwise Conv2d(dim, dim, 3, stride=1, pad=1, groups=dim, bias=True).

    x_nchw: (N, C, H, W)   weight: (C, 1, 3, 3)   bias: (C,)
    Returns (N, C, H, W), same dtype as the input.
    """
    N, C, H, W = x_nchw.shape
    assert weight.shape == (C, 1, 3, 3) and bias.shape == (C,)
    assert H >= 2 and W >= 2, "roll+mask zero-padding needs H >= 2 and W >= 2"
    HW = H * W

    # Contiguous NCHW -> flattened-HW view is a free reshape; output reshaped back.
    x_flat = x_nchw.reshape(N, C, HW)

    c_blk = _pick_c_blk(C, HW, x_nchw.dtype.itemsize)

    # Per-channel taps + bias, no spatial broadcast: (C, 10) f32.
    taps = weight.astype(jnp.float32).reshape(C, 9)
    wb = jnp.concatenate([taps, bias.astype(jnp.float32).reshape(C, 1)], axis=1)

    # Border masks on the flattened axis; DMA'd once (constant block index).
    pos = jnp.arange(HW, dtype=jnp.int32)
    col = pos % W
    row = pos // W
    masks = jnp.stack(
        [col >= 1, col <= W - 2, row >= 1, row <= H - 2]
    ).astype(jnp.float32)                                  # (4, HW)

    out_flat = pl.pallas_call(
        functools.partial(_dwconv_kernel, W=W),
        out_shape=jax.ShapeDtypeStruct((N, C, HW), x_nchw.dtype),
        grid_spec=pltpu.PrefetchScalarGridSpec(
            num_scalar_prefetch=0,
            grid=(N, C // c_blk),
            in_specs=[
                pl.BlockSpec((pl.Squeezed(), c_blk, HW), lambda n, c: (n, c, 0)),
                pl.BlockSpec((c_blk, 10), lambda n, c: (c, 0)),
                pl.BlockSpec((4, HW), lambda n, c: (0, 0)),
            ],
            out_specs=pl.BlockSpec((pl.Squeezed(), c_blk, HW),
                                   lambda n, c: (n, c, 0)),
        ),
        compiler_params=pltpu.CompilerParams(
            dimension_semantics=("parallel", "parallel")),
    )(x_flat, wb, masks)

    return out_flat.reshape(N, C, H, W)


def dwconv_reference(x_nchw, weight, bias):
    """Pure-JAX reference (lax depthwise conv) for correctness check."""
    C = x_nchw.shape[1]
    out = lax.conv_general_dilated(
        x_nchw.astype(jnp.float32),
        weight.astype(jnp.float32),
        window_strides=(1, 1),
        padding=((1, 1), (1, 1)),
        dimension_numbers=("NCHW", "OIHW", "NCHW"),
        feature_group_count=C,
    )
    return (out + bias.reshape(1, C, 1, 1)).astype(x_nchw.dtype)


if __name__ == "__main__":
    key = jax.random.PRNGKey(0)
    k_x, k_w, k_b = jax.random.split(key, 3)

    N, C, H, W = 2, 8, 16, 16  # small synthetic shapes; dim == C == 8
    x = jax.random.normal(k_x, (N, C, H, W), dtype=jnp.float32)
    # Conv2d(dim, dim, 3, groups=dim) weight shape: (dim, 1, 3, 3); bias: (dim,)
    weight = jax.random.normal(k_w, (C, 1, 3, 3), dtype=jnp.float32) * 0.1
    bias = jax.random.normal(k_b, (C,), dtype=jnp.float32) * 0.1

    out = jax.block_until_ready(dwconv_pallas(x, weight, bias))
    ref = dwconv_reference(x, weight, bias)

    assert out.shape == (N, C, H, W)
    assert jnp.allclose(out, ref, atol=1e-5, rtol=1e-5), "mismatch vs reference"

    print("KERNEL_OK")
</pallas_src>

<mosaic_0001>
module attributes {stable_mosaic.version = 11 : i64} {
  func.func @_dwconv_kernel(%arg0: i32, %arg1: i32, %arg2: memref<1x8x256xf32, #tpu.memory_space<vmem>>, %arg3: memref<8x10xf32, #tpu.memory_space<vmem>>, %arg4: memref<4x256xf32, #tpu.memory_space<vmem>>, %arg5: memref<1x8x256xf32, #tpu.memory_space<vmem>>) attributes {dimension_semantics = [#tpu.dimension_semantics<parallel>, #tpu.dimension_semantics<parallel>], iteration_bounds = array<i64: 2, 1>, scalar_prefetch = 0 : i64, scratch_operands = 0 : i64, tpu.core_type = #tpu.core_type<tc>, window_params = [{transform_indices = @transform_0, window_bounds = array<i64: 1, 8, 256>}, {transform_indices = @transform_1, window_bounds = array<i64: 8, 10>}, {pipeline_mode = #tpu.pipeline_mode<synchronous>, transform_indices = @transform_2, window_bounds = array<i64: 4, 256>}, {transform_indices = @transform_3, window_bounds = array<i64: 1, 8, 256>}]} {
    %c0 = arith.constant 0 : index
    %c0_0 = arith.constant 0 : index
    %c0_1 = arith.constant 0 : index
    %0 = vector.load %arg2[%c0, %c0_0, %c0_1] : memref<1x8x256xf32, #tpu.memory_space<vmem>>, vector<1x8x256xf32>
    %1 = vector.shape_cast %0 : vector<1x8x256xf32> to vector<8x256xf32>
    %c0_2 = arith.constant 0 : index
    %c0_3 = arith.constant 0 : index
    %2 = vector.load %arg3[%c0_2, %c0_3] : memref<8x10xf32, #tpu.memory_space<vmem>>, vector<8x10xf32>
    %c0_4 = arith.constant 0 : index
    %c0_5 = arith.constant 0 : index
    %3 = vector.load %arg4[%c0_4, %c0_5] : memref<4x256xf32, #tpu.memory_space<vmem>>, vector<4x256xf32>
    %4 = vector.extract_strided_slice %3 {offsets = [0, 0], sizes = [1, 256], strides = [1, 1]} : vector<4x256xf32> to vector<1x256xf32>
    %5 = vector.extract_strided_slice %3 {offsets = [1, 0], sizes = [1, 256], strides = [1, 1]} : vector<4x256xf32> to vector<1x256xf32>
    %6 = vector.extract_strided_slice %3 {offsets = [2, 0], sizes = [1, 256], strides = [1, 1]} : vector<4x256xf32> to vector<1x256xf32>
    %7 = vector.extract_strided_slice %3 {offsets = [3, 0], sizes = [1, 256], strides = [1, 1]} : vector<4x256xf32> to vector<1x256xf32>
    %c1_i32 = arith.constant 1 : i32
    %8 = tpu.dynamic_rotate %1 by %c1_i32 dim 1 : vector<8x256xf32>, i32 -> vector<8x256xf32>
    %9 = vector.broadcast %4 : vector<1x256xf32> to vector<8x256xf32>
    %10 = arith.mulf %8, %9 : vector<8x256xf32>
    %c255_i32 = arith.constant 255 : i32
    %11 = tpu.dynamic_rotate %1 by %c255_i32 dim 1 : vector<8x256xf32>, i32 -> vector<8x256xf32>
    %12 = vector.broadcast %5 : vector<1x256xf32> to vector<8x256xf32>
    %13 = arith.mulf %11, %12 : vector<8x256xf32>
    %14 = vector.extract_strided_slice %2 {offsets = [0, 0], sizes = [8, 1], strides = [1, 1]} : vector<8x10xf32> to vector<8x1xf32>
    %15 = vector.broadcast %14 : vector<8x1xf32> to vector<8x256xf32>
    %16 = arith.mulf %15, %10 : vector<8x256xf32>
    %17 = vector.extract_strided_slice %2 {offsets = [0, 1], sizes = [8, 1], strides = [1, 1]} : vector<8x10xf32> to vector<8x1xf32>
    %18 = vector.broadcast %17 : vector<8x1xf32> to vector<8x256xf32>
    %19 = arith.mulf %18, %1 : vector<8x256xf32>
    %20 = arith.addf %16, %19 : vector<8x256xf32>
    %21 = vector.extract_strided_slice %2 {offsets = [0, 2], sizes = [8, 1], strides = [1, 1]} : vector<8x10xf32> to vector<8x1xf32>
    %22 = vector.broadcast %21 : vector<8x1xf32> to vector<8x256xf32>
    %23 = arith.mulf %22, %13 : vector<8x256xf32>
    %24 = arith.addf %20, %23 : vector<8x256xf32>
    %25 = vector.extract_strided_slice %2 {offsets = [0, 3], sizes = [8, 1], strides = [1, 1]} : vector<8x10xf32> to vector<8x1xf32>
    %26 = vector.broadcast %25 : vector<8x1xf32> to vector<8x256xf32>
    %27 = arith.mulf %26, %10 : vector<8x256xf32>
    %28 = vector.extract_strided_slice %2 {offsets = [0, 4], sizes = [8, 1], strides = [1, 1]} : vector<8x10xf32> to vector<8x1xf32>
    %29 = vector.broadcast %28 : vector<8x1xf32> to vector<8x256xf32>
    %30 = arith.mulf %29, %1 : vector<8x256xf32>
    %31 = arith.addf %27, %30 : vector<8x256xf32>
    %32 = vector.extract_strided_slice %2 {offsets = [0, 5], sizes = [8, 1], strides = [1, 1]} : vector<8x10xf32> to vector<8x1xf32>
    %33 = vector.broadcast %32 : vector<8x1xf32> to vector<8x256xf32>
    %34 = arith.mulf %33, %13 : vector<8x256xf32>
    %35 = arith.addf %31, %34 : vector<8x256xf32>
    %36 = vector.extract_strided_slice %2 {offsets = [0, 6], sizes = [8, 1], strides = [1, 1]} : vector<8x10xf32> to vector<8x1xf32>
    %37 = vector.broadcast %36 : vector<8x1xf32> to vector<8x256xf32>
    %38 = arith.mulf %37, %10 : vector<8x256xf32>
    %39 = vector.extract_strided_slice %2 {offsets = [0, 7], sizes = [8, 1], strides = [1, 1]} : vector<8x10xf32> to vector<8x1xf32>
    %40 = vector.broadcast %39 : vector<8x1xf32> to vector<8x256xf32>
    %41 = arith.mulf %40, %1 : vector<8x256xf32>
    %42 = arith.addf %38, %41 : vector<8x256xf32>
    %43 = vector.extract_strided_slice %2 {offsets = [0, 8], sizes = [8, 1], strides = [1, 1]} : vector<8x10xf32> to vector<8x1xf32>
    %44 = vector.broadcast %43 : vector<8x1xf32> to vector<8x256xf32>
    %45 = arith.mulf %44, %13 : vector<8x256xf32>
    %46 = arith.addf %42, %45 : vector<8x256xf32>
    %47 = vector.extract_strided_slice %2 {offsets = [0, 9], sizes = [8, 1], strides = [1, 1]} : vector<8x10xf32> to vector<8x1xf32>
    %48 = vector.broadcast %47 : vector<8x1xf32> to vector<8x256xf32>
    %49 = arith.addf %35, %48 : vector<8x256xf32>
    %c16_i32 = arith.constant 16 : i32
    %50 = tpu.dynamic_rotate %24 by %c16_i32 dim 1 : vector<8x256xf32>, i32 -> vector<8x256xf32>
    %51 = vector.broadcast %6 : vector<1x256xf32> to vector<8x256xf32>
    %52 = arith.mulf %50, %51 : vector<8x256xf32>
    %53 = arith.addf %49, %52 : vector<8x256xf32>
    %c240_i32 = arith.constant 240 : i32
    %54 = tpu.dynamic_rotate %46 by %c240_i32 dim 1 : vector<8x256xf32>, i32 -> vector<8x256xf32>
    %55 = vector.broadcast %7 : vector<1x256xf32> to vector<8x256xf32>
    %56 = arith.mulf %54, %55 : vector<8x256xf32>
    %57 = arith.addf %53, %56 : vector<8x256xf32>
    %c0_6 = arith.constant 0 : index
    %c0_7 = arith.constant 0 : index
    %c0_8 = arith.constant 0 : index
    %58 = vector.load %arg5[%c0_6, %c0_7, %c0_8] : memref<1x8x256xf32, #tpu.memory_space<vmem>>, vector<1x8x256xf32>
    %59 = vector.shape_cast %58 : vector<1x8x256xf32> to vector<8x256xf32>
    %60 = vector.shape_cast %57 : vector<8x256xf32> to vector<1x8x256xf32>
    tpu.vector_store %arg5[%c0_6, %c0_7, %c0_8], %60 {strides = array<i32>} : memref<1x8x256xf32, #tpu.memory_space<vmem>>, vector<1x8x256xf32>,
    return
  }
  func.func @transform_0(%arg0: i32, %arg1: i32) -> (i32, i32, i32) {
    %c0_i32 = arith.constant 0 : i32
    %c0_i32_0 = arith.constant 0 : i32
    return %arg0, %arg1, %c0_i32 : i32, i32, i32
  }
  func.func @transform_1(%arg0: i32, %arg1: i32) -> (i32, i32) {
    %c0_i32 = arith.constant 0 : i32
    %c0_i32_0 = arith.constant 0 : i32
    return %arg1, %c0_i32 : i32, i32
  }
  func.func @transform_2(%arg0: i32, %arg1: i32) -> (i32, i32) {
    %c0_i32 = arith.constant 0 : i32
    %c0_i32_0 = arith.constant 0 : i32
    %c0_i32_1 = arith.constant 0 : i32
    return %c0_i32, %c0_i32_0 : i32, i32
  }
  func.func @transform_3(%arg0: i32, %arg1: i32) -> (i32, i32, i32) {
    %c0_i32 = arith.constant 0 : i32
    %c0_i32_0 = arith.constant 0 : i32
    return %arg0, %arg1, %c0_i32 : i32, i32, i32
  }
}

</mosaic_0001>

<bundles_post_ra>
// kernel: tpu_custom_call.1
= control target key start
LH: loop header
LB: loop body
LE: loop exit
PB: predicated region body
PF: predicated region fallthrough
CT: control target
= control target key end

     0   :  { %8 = vsyncpa [#allocation3], 0  ;;  %s1180_s0 = inlined_call_operand.hbm [shape: f32[2,8,256], index: 0, kind: input, shape index: {}]   ;;  %s1181_s1 = inlined_call_operand.hbm [shape: f32[8,10], index: 1, kind: input, shape index: {}]   ;;  %s1182_s2 = inlined_call_operand.hbm [shape: f32[4,256], index: 2, kind: input, shape index: {}]   ;;  %s1183_s3 = inlined_call_operand.hbm [shape: f32[2,8,256], index: 3, kind: output, shape index: {}]  }
   0x1   :  { %10 = vsyncpa [#allocation3 + $0x1], 0 }
   0x2   :  { %11 = vsyncpa [#allocation6], 0 }
   0x3   :  { %12 = vsyncpa [#allocation4], 0 }
   0x4   :  { %14 = vsyncpa [#allocation4 + $0x1], 0  ;;  %s893_s12 = smov 0   ;;  %s895_s13 = smov 0  }
   0x5   :  { %s897_s14 = smov 0   ;;  %s899_s15 = smov 0  }
   0x6   :  { %s901_s16 = smov 0   ;;  %s903_s17 = smov 0  }
   0x7 LB: > { %s553_s18 = sadd.s32 4294967295, %s853_s17   ;;  %s554_s19 = sadd.s32 4294967294, %s853_s17   ;;  %s853_s17 = sphi %s903_s17, %s20_s17   ;;  %s849_s16 = sphi %s901_s16, %s1206_s16   ;;  %s845_s15 = sphi %s899_s15, %s1205_s15   ;;  %s841_s14 = sphi %s897_s14, %s1204_s14   ;;  %s837_s13 = sphi %s895_s13, %s1203_s13   ;;  %s833_s12 = sphi %s893_s12, %s1202_s12  }
   0x8   : > { %p54_p0 = scmp.ne.s32.totalorder %s837_s13, %s833_s12  ;;  %p927_p1 = scmp.eq.s32.totalorder %s553_s18, 0 }
   0x9   : > { %p931_p2 = scmp.eq.s32.totalorder %s553_s18, 1  ;;  %p133_p3 = scmp.eq.s32.totalorder %s554_s19, 1 }
   0xa   : > { %s1188_s20 = scalar_select %p927_p1, 1, 0 }
   0xb   : > { %s1189_s21 = scalar_select %p931_p2, 1, 0 }
   0xc   : > { %p937_p4 = por %p927_p1, %p54_p0  ;;  %p555_p5 = scmp.ge.s32.totalorder %s853_s17, 1 }
   0xd   : > { %p942_p6 = por %p133_p3, %p54_p0  ;;  %p140_p7 = scmp.lt.s32.totalorder %s853_s17, 3 }
   0xe   : > { %s1190_s22 = scalar_select %p937_p4, 1, 0 }
   0xf   : > { %s1191_s23 = scalar_select %p942_p6, 1, 0 }
  0x10   : > { %p947_p8 = pnand %p555_p5, %p140_p7  ;;  %s855_s25 = smov [#allocation5]  }
  0x11   : > { %s155_s26 = sshll.u32 %s855_s25, 4  ;;  %s856_s27 = smov [#allocation7]   ;;  %s156_s26 = int_to_ptr.vmem [resolvable:$true] %s155_s26 }
  0x12   : > { %s1192_s24 = scalar_select %p947_p8, 1, 0 }
  0x13   : > { %p586_p10 = pneg %p947_p8  ;;  %s166_s28 = sshll.u32 %s856_s27, 4  ;;  %s960_s28 = int_to_ptr.vmem [resolvable:$true] %s166_s28 }
  0x14   : > { %s681_s5 = scalar_lea.hbm %s1181_s1, 128 }
  0x15   : > { %p956_p11 = pnand %p586_p10, %p927_p1  ;;  %p682_p12 = scmp.ne.s32.totalorder %s1181_s1, %s681_s5 }
  0x16   : > { %p688_p5 = scmp.lt.u32.totalorder %s681_s5, %s1181_s1 }
  0x17   : > { %p683_p13 = pneg %p956_p11 }
  0x19   : > { %p684_p0 = pnand %p683_p13, %p682_p12 }
  0x1b   : > { %p685_p3 = pneg %p684_p0 }
  0x1d   : > { %p690_p7 = pnand %p688_p5, %p685_p3 }
  0x1f   : > { %693 = shalt.err (!%p690_p7)
}
  0x20   : > { %s694_s10 = scalar_lea.vmem %s156_s26, 128  ;;  %p702_p1 = scmp.lt.s32.totalorder %s156_s26, %s156_s26 }
  0x21   : > { %p695_p10 = scmp.ne.s32.totalorder %s156_s26, %s694_s10  ;;  %p703_p4 = scmp.lt.s32.totalorder %s694_s10, %s694_s10 }
  0x23   : > { %p697_p9 = pnand %p695_p10, %p683_p13  ;;  %p704_p8 = por %p703_p4, %p702_p1 }
  0x25   : > { %p698_p6 = pneg %p697_p9 }
  0x27   : > { %p705_p2 = pnand %p704_p8, %p698_p6 }
  0x29   : > { %708 = shalt.err (!%p705_p2)
}
  0x2a   : > { %589 = dma.hbm_to_vmem [thread:$0]  (!%p956_p11), %s1181_s1, 128, %s156_s26, [#allocation6]  }
  0x2b   : > { %s709_s27 = scalar_lea.hbm %s1182_s2, 128 }
  0x2c   : > { %p710_p9 = scmp.ne.s32.totalorder %s1182_s2, %s709_s27  ;;  %p716_p2 = scmp.lt.u32.totalorder %s709_s27, %s1182_s2 }
  0x2e   : > { %p712_p1 = pnand %p710_p9, %p683_p13 }
  0x30   : > { %p713_p4 = pneg %p712_p1 }
  0x32   : > { %p718_p6 = pnand %p716_p2, %p713_p4 }
  0x34   : > { %721 = shalt.err (!%p718_p6)
}
  0x35   : > { %s722_s26 = scalar_lea.vmem %s960_s28, 128  ;;  %p730_p3 = scmp.lt.s32.totalorder %s960_s28, %s960_s28 }
  0x36   : > { %p723_p8 = scmp.ne.s32.totalorder %s960_s28, %s722_s26  ;;  %p731_p5 = scmp.lt.s32.totalorder %s722_s26, %s722_s26 }
  0x38   : > { %p725_p12 = pnand %p723_p8, %p683_p13  ;;  %p732_p7 = por %p731_p5, %p730_p3 }
  0x3a   : > { %p726_p0 = pneg %p725_p12 }
  0x3c   : > { %p733_p10 = pnand %p732_p7, %p726_p0 }
  0x3e   : > { %736 = shalt.err (!%p733_p10)
}
  0x3f   : > { %592 = dma.hbm_to_vmem [thread:$0]  (!%p956_p11), %s1182_s2, 128, %s960_s28, [#allocation6]  }
  0x40   : > { %s32_s9 = sadd.s32 1, %s849_s16  ;;  %s41_s10 = sadd.s32 1, %s841_s14 }
  0x41   : > { %p34_p13 = scmp.ge.s32.totalorder %s32_s9, 2  ;;  %p48_p9 = scmp.ne.s32.totalorder %s841_s14, %s837_s13 }
  0x42   : > { %p49_p1 = scmp.eq.s32.totalorder %s853_s17, 0  ;;  %p603_p4 = scmp.lt.s32.totalorder %s853_s17, 2 }
  0x43   : > { %s1208_s9 = smov (%p34_p13, %s32_s9), 0  ;;  %p1194_p6 = scmp.ne.s32.totalorder %s1189_s21, 0 }
  0x44   : > { %p50_p2 = por %p49_p1, %p48_p9  ;;  %s36_s11 = ssub.s32 %s849_s16, %s1208_s9 }
  0x45   : > { %p1019_p8 = por %p1194_p6, %p48_p9  ;;  %s177_s18 = sand.u32 1, %s841_s14  }
  0x46   : > { %p39_p12 = scmp.eq.s32.totalorder %s36_s11, 0  ;;  %s559_s28 = sshll.u32 %s177_s18, 4 }
  0x47   : > { %s572_s19 = sshll.u32 %s849_s16, 8  ;;  %s181_s21 = scalar_lea.vmem [#allocation2], %s559_s28 }
  0x48   : > { %s1028_s25 = scalar_select %p39_p12, %s841_s14, %s41_s10  }
  0x49   : > { %s1033_s4 = scalar_lea.hbm %s1180_s0, %s572_s19  ;;  %s191_s5 = sshll.u32 %s181_s21, 4  ;;  %s1041_s5 = int_to_ptr.vmem [resolvable:$true] %s191_s5 }
  0x4a   : > { %p1037_p11 = pnand %p603_p4, %p50_p2  ;;  %s178_s26 = scalar_lea.sflag [#allocation3], %s177_s18 }
  0x4b   : > { %s737_s7 = scalar_lea.hbm %s1033_s4, 256  ;;  %s742_s11 = scalar_lea.hbm %s1180_s0, 512 }
  0x4c   : > { %p738_p0 = scmp.ne.s32.totalorder %s1033_s4, %s737_s7  ;;  %p739_p3 = pneg %p1037_p11 }
  0x4d   : > { %p743_p10 = scmp.lt.u32.totalorder %s1033_s4, %s1180_s0  ;;  %p744_p13 = scmp.lt.u32.totalorder %s742_s11, %s737_s7 }
  0x4e   : > { %p740_p5 = pnand %p739_p3, %p738_p0  ;;  %p746_p1 = scmp.lt.u32.totalorder %s737_s7, %s1033_s4 }
  0x4f   : > { %p745_p9 = por %p744_p13, %p743_p10 }
  0x50   : > { %p741_p7 = pneg %p740_p5 }
  0x51   : > { %p747_p4 = por %p746_p1, %p745_p9 }
  0x53   : > { %p748_p2 = pnand %p747_p4, %p741_p7 }
  0x55   : > { %751 = shalt.err (!%p748_p2)
}
  0x56   : > { %s752_s18 = scalar_lea.vmem %s1041_s5, 256  ;;  %s857_s27 = smov [#allocation2]  }
  0x57   : > { %p753_p6 = scmp.ne.s32.totalorder %s1041_s5, %s752_s18  ;;  %s757_s30 = sshll.u32 %s857_s27, 4  ;;  %s758_s30 = int_to_ptr.vmem [resolvable:$false] %s757_s30 }
  0x58   : > { %s759_s21 = scalar_lea.vmem %s758_s30, 512  ;;  %p760_p5 = scmp.lt.s32.totalorder %s1041_s5, %s758_s30 }
  0x59   : > { %p755_p12 = pnand %p753_p6, %p739_p3  ;;  %p761_p10 = scmp.lt.s32.totalorder %s759_s21, %s752_s18 }
  0x5b   : > { %p756_p0 = pneg %p755_p12  ;;  %p762_p13 = por %p761_p10, %p760_p5 }
  0x5d   : > { %p763_p9 = pnand %p762_p13, %p756_p0 }
  0x5f   : > { %766 = shalt.err (!%p763_p9)
}
  0x60   : > { %596 = dma.hbm_to_vmem [thread:$0]  (!%p1037_p11), %s1033_s4, 256, %s1041_s5, %s178_s26  }
  0x61   : > { %p1197_p7 = scmp.ne.s32.totalorder %s1192_s24, 0 }
  0x62   : > { %s1071_s7 = sand.u32 (!%p1197_p7), 1, %s837_s13   ;;  %p1198_p3 = scmp.ne.s32.totalorder (!%p1197_p7), %s1190_s22, 0 }
  0x63   : > { %200 = sbr.rel (%p1197_p7) target bundleno = 411 (0x19b), region = 32  ;;  %s563_s8 = sshll.u32 (!%p1197_p7), %s1071_s7, 4 }
  0x64   : > { %s203_s10 = scalar_lea.sflag (!%p1197_p7), [#allocation3], %s1071_s7  ;;  %s206_s11 = scalar_lea.vmem (!%p1197_p7), [#allocation2], %s563_s8 }
  0x6a   : > { %820 = dma.done.wait (%p1198_p3), %s203_s10, 256  }
  0x6b   : > { %822 = vsyncadd (%p1198_p3), %s203_s10, 4294967040  ;;  %p1199_p11 = scmp.ne.s32.totalorder %s1188_s20, 0 }
  0x6d   : > { %824 = dma.done.wait (%p1199_p11), [#allocation6], 256  }
  0x6e   : > { %826 = vsyncadd (%p1199_p11), [#allocation6], 4294967040  ;;  %v858_v0 = vmov 2   ;;  %v859_v1 = vmov 0   ;;  %v239_v2 = vld [vmem:[#allocation5] sm:$0xff]  ;;  %v860_v3 = vmov 6   ;;  %v245_v13 = vlaneseq }
  0x6f   : > { %673 = vset.pattern.permute.xlu1 %v858_v0  ;;  %671 = vset.pattern.permute.xlu0 %v859_v1  ;;  %v861_v4 = vmov 1   ;;  %v1085_v5 = vld [vmem:[%s206_s11] sm:$0xff]  ;;  %v862_v6 = vmov 7   ;;  %s863_s22 = smov 1   ;;  %v864_v7 = vmov 8   ;;  %v1088_v8 = vld [vmem:[%s206_s11 + $0x8] sm:$0xff] }
  0x70   : > { %314 = vperm.xlu1 %673, %v239_v2   ;;  %300 = vperm.xlu0 %671, %v239_v2   ;;  %v865_v9 = vmov 4   ;;  %v866_v10 = vmov 3   ;;  %s867_s20 = smov 127   ;;  %v868_v11 = vmov 9   ;;  %v869_v12 = vmov 5   ;;  %v1096_v19 = vld [vmem:[#allocation7] sm:$0xff] }
  0x71   : > { %v1093_v16 = vshrl.u32 %v245_v13, 7  ;;  %v1098_v21 = vand.u32 127, %v245_v13  ;;  %s870_s24 = smov 112   ;;  %s871_s4 = smov 16  }
  0x72   : > { %s573_s5 = sshll.u32 %s845_s15, 8  ;;  %s236_s6 = scalar_lea.vmem [#allocation8], %s563_s8 }
  0x73   : > { %v253_v18 = vsub.s32 0, %v1093_v16  ;;  %v257_v22 = vsub.s32 4, %v1093_v16  ;;  %vm247_vm0 = vcmp.lt.s32.totalorder %v1098_v21, 1  ;;  %v280_v25 = vsub.s32 1, %v1093_v16  ;;  %s448_s26 = sshll.u32 %s236_s6, 4  ;;  %s1131_s18 = scalar_lea.hbm %s1183_s3, %s573_s5  ;;  %s1133_s26 = int_to_ptr.vmem [resolvable:$true] %s448_s26 }
  0x74   : > { %674 = vset.pattern.permute.xlu1 %v860_v3  ;;  %672 = vset.pattern.permute.xlu0 %v861_v4  ;;  %v284_v26 = vsub.s32 5, %v1093_v16  ;;  %vm275_vm1 = vcmp.lt.s32.totalorder %v1098_v21, 127  ;;  %vm375_vm2 = vcmp.lt.s32.totalorder %v1098_v21, 16  ;;  %vm404_vm3 = vcmp.lt.s32.totalorder %v1098_v21, 112  ;;  %s432_s15 = scalar_lea.sflag [#allocation4], %s1071_s7  ;;  %s767_s27 = scalar_lea.vmem %s1133_s26, 256 }
  0x75   : > { %344 = vperm.xlu1 %674, %v239_v2   ;;  %306 = vperm.xlu0 %672, %v239_v2   ;;  %v254_v24 = vrot.slane %v1096_v19, %v253_v18  ;;  %v258_v27 = vrot.slane %v1096_v19, %v257_v22  ;;  %v281_v32 = vrot.slane %v1096_v19, %v280_v25  ;;  %p768_p1 = scmp.ne.s32.totalorder %s1133_s26, %s767_s27  ;;  %s872_s30 = smov [#allocation8]  }
  0x76   : > { %v285_v33 = vrot.slane %v1096_v19, %v284_v26  ;;  %s771_s21 = sshll.u32 %s872_s30, 4  ;;  %s772_s21 = int_to_ptr.vmem [resolvable:$false] %s771_s21 }
  0x77   : > { %v264_v29 = vrot.slane %v254_v24, %v253_v18  ;;  %v268_v34 = vrot.slane %v258_v27, %v253_v18  ;;  %v291_v38 = vrot.slane %v281_v32, %v280_v25  ;;  %v380_v18 = vsub.s32 2, %v1093_v16  ;;  %p769_p4 = pnand %p768_p1, %p1019_p8  ;;  %s773_s8 = scalar_lea.vmem %s772_s21, 512 }
  0x78   : > { %v295_v39 = vrot.slane %v285_v33, %v280_v25  ;;  %v413_v24 = vsub.s32 7, %v1093_v16  ;;  %p774_p6 = scmp.lt.s32.totalorder %s1133_s26, %s772_s21  ;;  %p775_p12 = scmp.lt.s32.totalorder %s773_s8, %s767_s27 }
  0x79   : > { %675 = vset.pattern.permute.xlu1 %v862_v6  ;;  %241 = vrot.lane.b32.xlu0 %v1085_v5, %s863_s22  ;;  %v381_v22 = vrot.slane %v1096_v19, %v380_v18  ;;  %p770_p2 = pneg %p769_p4 }
  0x7a   : > { %350 = vperm.xlu1 %675, %v239_v2   ;;  %676 = vset.pattern.permute.xlu0 %v864_v7  ;;  %p776_p0 = por %p775_p12, %p774_p6 }
  0x7b   : > { %v391_v26 = vrot.slane %v381_v22, %v380_v18 }
  0x7c   : > { %p777_p5 = pnand %p776_p0, %p770_p2 }
  0x7d   : > { %358 = vperm.xlu0 %676, %v239_v2  }
  0x7e   : > { %243 = vrot.lane.b32.xlu1 %v1088_v8, %s863_s22 }
  0x7f   : > { %678 = vset.pattern.permute.xlu1 %v865_v9 }
  0x81   : > { %677 = vset.pattern.permute.xlu0 %v866_v10 }
  0x82   : > { %271 = vrot.lane.b32.xlu1 %v1085_v5, %s867_s20  ;;  %322 = vperm.xlu0 %677, %v239_v2  }
  0x86   : > { %273 = vrot.lane.b32.xlu1 %v1088_v8, %s867_s20  ;;  %680 = vset.pattern.permute.xlu0 %v868_v11 }
  0x87   : > { %366 = vperm.xlu0 %680, %v239_v2  }
  0x8a   : > { %328 = vperm.xlu1 %678, %v239_v2  }
  0x8e   : > { %679 = vset.pattern.permute.xlu1 %v869_v12 }
  0x8f   : > { %336 = vperm.xlu1 %679, %v239_v2  }
  0xef   : > { %v315_v14 = vpop.permute.xlu1 %314  ;;  %v301_v15 = vpop.permute.xlu0 %300 }
  0xf4   : > { %v345_v17 = vpop.permute.xlu1 %344  ;;  %v307_v20 = vpop.permute.xlu0 %306 }
  0xf5   : > { %v309_v42 = vmul.f32 %v307_v20, %v1085_v5  ;;  %v310_v51 = vmul.f32 %v307_v20, %v1088_v8  ;;  %v384_v20 = vsub.s32 6, %v1093_v16 }
  0xf8   : > { %v242_v28 = vpop.permute.xlu0 %241 }
  0xf9   : > { %v351_v23 = vpop.permute.xlu1 %350 }
  0xfa   : > { %v353_v48 = vmul.f32 %v351_v23, %v1085_v5  ;;  %v354_v4 = vmul.f32 %v351_v23, %v1088_v8  ;;  %v409_v23 = vsub.s32 3, %v1093_v16 }
  0xfc   : > { %v359_v41 = vpop.permute.xlu0 %358 }
  0xfd   : > { %v244_v30 = vpop.permute.xlu1 %243 }
  0xfe   : > { %v249_v31 = vsel %vm247_vm0, %v244_v30, %v242_v28  ;;  %v248_v35 = vsel %vm247_vm0, %v242_v28, %v244_v30  ;;  %v410_v28 = vrot.slane %v1096_v19, %v409_v23 }
  0xff   : > { %v269_v36 = vmul.f32 %v264_v29, %v249_v31  ;;  %v270_v40 = vmul.f32 %v268_v34, %v248_v35  ;;  %v414_v29 = vrot.slane %v1096_v19, %v413_v24 }
 0x100   : > { %v420_v16 = vrot.slane %v410_v28, %v409_v23 }
 0x101   : > { %v272_v37 = vpop.permute.xlu1 %271  ;;  %v303_v43 = vmul.f32 %v301_v15, %v269_v36  ;;  %v347_v44 = vmul.f32 %v345_v17, %v269_v36  ;;  %v304_v52 = vmul.f32 %v301_v15, %v270_v40  ;;  %v323_v58 = vpop.permute.xlu0 %322  ;;  %v348_v1 = vmul.f32 %v345_v17, %v270_v40 }
 0x102   : > { %v325_v2 = vmul.f32 %v323_v58, %v269_v36  ;;  %v326_v3 = vmul.f32 %v323_v58, %v270_v40  ;;  %v424_v36 = vrot.slane %v414_v29, %v409_v23 }
 0x103   : > { %v355_v54 = vadd.f32 %v353_v48, %v347_v44  ;;  %v311_v56 = vadd.f32 %v309_v42, %v303_v43  ;;  %v312_v0 = vadd.f32 %v310_v51, %v304_v52  ;;  %v356_v15 = vadd.f32 %v354_v4, %v348_v1 }
 0x105   : > { %v274_v45 = vpop.permute.xlu1 %273 }
 0x106   : > { %v276_v46 = vsel %vm275_vm1, %v272_v37, %v274_v45  ;;  %v277_v47 = vsel %vm275_vm1, %v274_v45, %v272_v37  ;;  %v367_v30 = vpop.permute.xlu0 %366 }
 0x107   : > { %v296_v49 = vmul.f32 %v291_v38, %v276_v46  ;;  %v297_v50 = vmul.f32 %v295_v39, %v277_v47 }
 0x109   : > { %v329_v53 = vpop.permute.xlu1 %328  ;;  %v361_v55 = vmul.f32 %v359_v41, %v296_v49  ;;  %v317_v57 = vmul.f32 %v315_v14, %v296_v49  ;;  %v318_v59 = vmul.f32 %v315_v14, %v297_v50  ;;  %v362_v9 = vmul.f32 %v359_v41, %v297_v50 }
 0x10a   : > { %v331_v60 = vmul.f32 %v329_v53, %v1085_v5  ;;  %v332_v61 = vmul.f32 %v329_v53, %v1088_v8  ;;  %v385_v8 = vrot.slane %v1096_v19, %v384_v20 }
 0x10b   : > { %v363_v62 = vadd.f32 %v361_v55, %v355_v54  ;;  %v319_v63 = vadd.f32 %v317_v57, %v311_v56  ;;  %v320_v7 = vadd.f32 %v318_v59, %v312_v0  ;;  %v364_v17 = vadd.f32 %v362_v9, %v356_v15 }
 0x10c   : > { %v333_v10 = vadd.f32 %v331_v60, %v325_v2  ;;  %v334_v11 = vadd.f32 %v332_v61, %v326_v3  ;;  %v395_v27 = vrot.slane %v385_v8, %v380_v18 }
 0x10d   : > { %400 = vrot.lane.b32.xlu0 %v363_v62, %s870_s24  ;;  %371 = vrot.lane.b32.xlu1 %v319_v63, %s871_s4 }
 0x10e   : > { %v337_v6 = vpop.permute.xlu1 %336 }
 0x10f   : > { %v339_v5 = vmul.f32 %v337_v6, %v296_v49  ;;  %v340_v12 = vmul.f32 %v337_v6, %v297_v50 }
 0x111   : > { %373 = vrot.lane.b32.xlu1 %v320_v7, %s871_s4  ;;  %v341_v13 = vadd.f32 %v339_v5, %v333_v10  ;;  %v342_v14 = vadd.f32 %v340_v12, %v334_v11 }
 0x113   : > { %v369_v37 = vadd.f32 %v367_v30, %v341_v13  ;;  %v370_v38 = vadd.f32 %v367_v30, %v342_v14 }
 0x115   : > { %402 = vrot.lane.b32.xlu1 %v364_v17, %s870_s24 }
 0x17f   : > { %v372_v25 = vpop.permute.xlu1 %371  ;;  %v401_v39 = vpop.permute.xlu0 %400 }
 0x183   : > { %v374_v31 = vpop.permute.xlu1 %373 }
 0x184   : > { %v376_v32 = vsel %vm375_vm2, %v372_v25, %v374_v31  ;;  %v377_v33 = vsel %vm375_vm2, %v374_v31, %v372_v25 }
 0x185   : > { %v396_v34 = vmul.f32 %v391_v26, %v377_v33  ;;  %v397_v35 = vmul.f32 %v395_v27, %v376_v32 }
 0x187   : > { %v403_v40 = vpop.permute.xlu1 %402  ;;  %v398_v19 = vadd.f32 %v396_v34, %v369_v37  ;;  %v399_v43 = vadd.f32 %v397_v35, %v370_v38 }
 0x188   : > { %v405_v41 = vsel %vm404_vm3, %v401_v39, %v403_v40  ;;  %v406_v42 = vsel %vm404_vm3, %v403_v40, %v401_v39 }
 0x189   : > { %v425_v44 = vmul.f32 %v420_v16, %v405_v41  ;;  %v426_v21 = vmul.f32 %v424_v36, %v406_v42 }
 0x18b   : > { %v427_v45 = vadd.f32 %v425_v44, %v398_v19  ;;  %v428_v46 = vadd.f32 %v426_v21, %v399_v43 }
 0x18d   : > { %429 = vst [vmem:[%s236_s6] sm:$0xff] %v427_v45  ;;  %430 = vst [vmem:[%s236_s6 + $0x8] sm:$0xff] %v428_v46 }
 0x18e   : > { %780 = shalt.err (!%p777_p5)
}
 0x18f   : > { %s781_s7 = scalar_lea.hbm %s1131_s18, 256  ;;  %s785_s22 = scalar_lea.hbm %s1183_s3, 512 }
 0x190   : > { %p782_p10 = scmp.ne.s32.totalorder %s1131_s18, %s781_s7  ;;  %p786_p7 = scmp.lt.u32.totalorder %s1131_s18, %s1183_s3 }
 0x191   : > { %p787_p3 = scmp.lt.u32.totalorder %s785_s22, %s781_s7  ;;  %p789_p1 = scmp.lt.u32.totalorder %s781_s7, %s1131_s18 }
 0x192   : > { %p783_p13 = pnand %p782_p10, %p1019_p8 }
 0x193   : > { %p788_p11 = por %p787_p3, %p786_p7 }
 0x194   : > { %p784_p9 = pneg %p783_p13 }
 0x195   : > { %p790_p4 = por %p789_p1, %p788_p11 }
 0x197   : > { %p791_p2 = pnand %p790_p4, %p784_p9 }
 0x199   : > { %794 = shalt.err (!%p791_p2)
}
 0x19a   : > { %584 = dma.vmem_to_hbm [thread:$0]  (%p1019_p8), %s1133_s26, 256, %s1131_s18, %s432_s15  }
 0x19b PF: > { %s460_s4 = sand.u32 1, %s833_s12   ;;  %p1200_p6 = scmp.ne.s32.totalorder %s1191_s23, 0 }
 0x19c   : > { %p1201_p12 = scmp.ge.s32.totalorder %s853_s17, 2  ;;  %s461_s5 = scalar_lea.sflag [#allocation4], %s460_s4 }
 0x19e   : > { %p598_p0 = pnand %p1201_p12, %p1200_p6 }
 0x1a0   : > { %828 = dma.done.wait (!%p598_p0), %s461_s5, 256  }
 0x1a1   : > { %830 = vsyncadd (!%p598_p0), %s461_s5, 4294967040  ;;  %s20_s17 = sadd.s32 1, %s853_s17   ;;  %s1202_s12 = smov %s837_s13 }
 0x1a2   : > { %p17_p5 = scmp.ge.s32.totalorder %s20_s17, 4   ;;  %s1203_s13 = smov %s841_s14 }
 0x1a3   : > { %s1204_s14 = smov %s1028_s25  ;;  %s1205_s15 = smov %s849_s16 }
 0x1a4   : > { %s1206_s16 = smov %s1208_s9  ;;  %19 = sbr.rel (!%p17_p5) target bundleno = 7 (0x7), region = 86 }
 0x1ab   :  { %466 = vsyncpa [#allocation3], 1 }
 0x1ac   :  { %468 = vsyncpa [#allocation3 + $0x1], 1 }
 0x1ad   :  { %469 = vsyncpa [#allocation6], 1 }
 0x1ae   :  { %470 = vsyncpa [#allocation4], 1 }
 0x1af   :  { %472 = vsyncpa [#allocation4 + $0x1], 1 }

</bundles_post_ra>
